<compile_context>
chip_gen: v6e
topology: v6e:2x2x1
jax: 0.10.0
libtpu: 0.0.40
codegen_flags: <defaults>
</compile_context>

<pallas_src>
import jax
import jax.numpy as jnp
from jax import lax
from jax.experimental import pallas as pl
from jax.experimental.pallas import tpu as pltpu

EPS = 1e-5


def _gelu_exact(x):
    # PyTorch default gelu: 0.5 * x * (1 + erf(x / sqrt(2)))
    return 0.5 * x * (1.0 + lax.erf(x * 0.7071067811865476))


def _bn_train(h, gamma, beta):
    # BatchNorm1d training mode, single-pass statistics:
    # mean = E[h], var = E[h^2] - mean^2 (biased), then gamma/beta affine.
    inv_n = 1.0 / h.shape[0]
    s = jnp.sum(h, axis=0, keepdims=True)
    sq = jnp.sum(h * h, axis=0, keepdims=True)
    mean = s * inv_n
    var = jnp.maximum(sq * inv_n - mean * mean, 0.0)
    return (h - mean) * lax.rsqrt(var + EPS) * gamma + beta


def _fc_bn_gelu_kernel(x_ref, w_ref, gb_ref, o_ref, acc_ref):
    """out = gelu(bn(x @ w.T)) for one (batch, tn) output tile."""
    k = pl.program_id(1)

    @pl.when(k == 0)
    def _():
        acc_ref[...] = jnp.zeros_like(acc_ref)

    # x:(B, tk) . w:(tn, tk) contracted on dim 1 of both == x @ w.T (MXU).
    acc_ref[...] += lax.dot_general(
        x_ref[...], w_ref[...],
        dimension_numbers=(((1,), (1,)), ((), ())),
        preferred_element_type=jnp.float32)

    @pl.when(k == pl.num_programs(1) - 1)
    def _():
        gb = gb_ref[...].astype(jnp.float32)         # (2, tn)
        h = _bn_train(acc_ref[...], gb[0:1, :], gb[1:2, :])
        o_ref[...] = _gelu_exact(h).astype(o_ref.dtype)


def _fc_bn_res_gelu_kernel(x_ref, w_ref, gb_ref, res_ref, o_ref, acc_ref):
    """out = gelu(bn(x @ w.T) + residual) for one (batch, tn) output tile."""
    k = pl.program_id(1)

    @pl.when(k == 0)
    def _():
        acc_ref[...] = jnp.zeros_like(acc_ref)

    acc_ref[...] += lax.dot_general(
        x_ref[...], w_ref[...],
        dimension_numbers=(((1,), (1,)), ((), ())),
        preferred_element_type=jnp.float32)

    @pl.when(k == pl.num_programs(1) - 1)
    def _():
        gb = gb_ref[...].astype(jnp.float32)         # (2, tn)
        h = _bn_train(acc_ref[...], gb[0:1, :], gb[1:2, :])
        # Residual read only at finalize; not live across the K accumulation.
        h = h + res_ref[...].astype(jnp.float32)
        o_ref[...] = _gelu_exact(h).astype(o_ref.dtype)


def _pick_tile(d, pref):
    """Largest of {pref, 512, 256, 128} dividing d, else the full dim."""
    for t in (pref, 512, 256, 128):
        if t <= d and d % t == 0:
            return t
    return d


def _linear_bn_gelu(x, w, gamma, beta, residual=None, *, tn, tk):
    B, D = x.shape
    grid = (D // tn, D // tk)
    gb = jnp.stack([gamma, beta], axis=0)            # (2, D), one DMA per tile

    in_specs = [
        pl.BlockSpec((B, tk), lambda n, k: (0, k)),    # activations: K tiles
        pl.BlockSpec((tn, tk), lambda n, k: (n, k)),   # weight (out,in) tiles
        pl.BlockSpec((2, tn), lambda n, k: (0, n)),    # packed gamma/beta tile
    ]
    args = [x, w, gb]

    if residual is not None:
        in_specs.append(pl.BlockSpec((B, tn), lambda n, k: (0, n)))
        args.append(residual)
        kernel = _fc_bn_res_gelu_kernel
    else:
        kernel = _fc_bn_gelu_kernel

    return pl.pallas_call(
        kernel,
        out_shape=jax.ShapeDtypeStruct((B, D), x.dtype),
        grid_spec=pltpu.PrefetchScalarGridSpec(
            num_scalar_prefetch=0,
            grid=grid,
            in_specs=in_specs,
            out_specs=pl.BlockSpec((B, tn), lambda n, k: (0, n)),
            scratch_shapes=[pltpu.VMEM((B, tn), jnp.float32)],
        ),
        compiler_params=pltpu.CompilerParams(
            # N tiles independent -> parallel (2 TCs on v7x);
            # K is the reduction -> arbitrary, last grid axis.
            dimension_semantics=("parallel", "arbitrary"),
            # Explicit scoped-VMEM budget that fits v5e/v6e/v7x alike.
            vmem_limit_bytes=32 * 1024 * 1024,
        ),
    )(*args)


def residual_block(x, w1, gamma1, beta1, w2, gamma2, beta2, *, tn=None, tk=None):
    """x: (B, D).  w1, w2: (D, D) in PyTorch (out, in) layout (NOT transposed)."""
    B, D = x.shape
    tn = tn or _pick_tile(D, 256)
    tk = tk or _pick_tile(D, 512)
    h = _linear_bn_gelu(x, w1, gamma1, beta1, tn=tn, tk=tk)
    return _linear_bn_gelu(h, w2, gamma2, beta2, residual=x, tn=tn, tk=tk)


def residual_block_ref(x, w1, gamma1, beta1, w2, gamma2, beta2):
    """Pure-JAX reference mirroring the PyTorch module (training-mode BN)."""
    def bn(h, g, b):
        m = jnp.mean(h, axis=0, keepdims=True)
        v = jnp.mean((h - m) ** 2, axis=0, keepdims=True)
        return (h - m) / jnp.sqrt(v + EPS) * g + b

    identity = x
    h = x @ w1.T
    h = _gelu_exact(bn(h, gamma1, beta1))
    h = h @ w2.T
    h = bn(h, gamma2, beta2)
    return _gelu_exact(h + identity)


if __name__ == "__main__":
    # Lane-dense demo shape (D multiple of 128); small but forces tn=tk=128
    # so the script exercises a real (2, 2) grid: K accumulation with
    # pl.when init/finalize plus the parallel N axis.
    B, D = 8, 256
    key = jax.random.PRNGKey(0)
    kx, kw1, kw2, kg1, kb1, kg2, kb2 = jax.random.split(key, 7)

    x = jax.random.normal(kx, (B, D), dtype=jnp.float32)
    bound = 1.0 / (D ** 0.5)
    w1 = jax.random.uniform(kw1, (D, D), jnp.float32, -bound, bound)
    w2 = jax.random.uniform(kw2, (D, D), jnp.float32, -bound, bound)
    gamma1 = 1.0 + 0.1 * jax.random.normal(kg1, (D,), jnp.float32)
    beta1 = 0.1 * jax.random.normal(kb1, (D,), jnp.float32)
    gamma2 = 1.0 + 0.1 * jax.random.normal(kg2, (D,), jnp.float32)
    beta2 = 0.1 * jax.random.normal(kb2, (D,), jnp.float32)

    out = residual_block(x, w1, gamma1, beta1, w2, gamma2, beta2,
                         tn=128, tk=128)
    out = jax.block_until_ready(out)

    ref = residual_block_ref(x, w1, gamma1, beta1, w2, gamma2, beta2)
    assert out.shape == ref.shape
    assert jnp.allclose(out, ref, atol=1e-4, rtol=1e-4), "mismatch vs reference"

    print("KERNEL_OK")
</pallas_src>

<mosaic_0001>
module attributes {stable_mosaic.version = 11 : i64} {
  func.func @_fc_bn_gelu_kernel(%arg0: i32, %arg1: i32, %arg2: memref<8x128xf32, #tpu.memory_space<vmem>>, %arg3: memref<128x128xf32, #tpu.memory_space<vmem>>, %arg4: memref<2x128xf32, #tpu.memory_space<vmem>>, %arg5: memref<8x128xf32, #tpu.memory_space<vmem>>, %arg6: memref<8x128xf32, #tpu.memory_space<vmem>>) attributes {dimension_semantics = [#tpu.dimension_semantics<parallel>, #tpu.dimension_semantics<arbitrary>], iteration_bounds = array<i64: 2, 2>, scalar_prefetch = 0 : i64, scratch_operands = 1 : i64, tpu.core_type = #tpu.core_type<tc>, window_params = [{transform_indices = @transform_0, window_bounds = array<i64: 8, 128>}, {transform_indices = @transform_1, window_bounds = array<i64: 128, 128>}, {transform_indices = @transform_2, window_bounds = array<i64: 2, 128>}, {transform_indices = @transform_3, window_bounds = array<i64: 8, 128>}]} {
    %c0_i32 = arith.constant 0 : i32
    %0 = arith.cmpi eq, %arg1, %c0_i32 : i32
    %1 = arith.extui %0 : i1 to i32
    %c0_i32_0 = arith.constant 0 : i32
    %2 = arith.cmpi ne, %1, %c0_i32_0 : i32
    scf.if %2 {
      %cst_9 = arith.constant 0.000000e+00 : f32
      %12 = vector.broadcast %cst_9 : f32 to vector<8x128xf32>
      %c0_10 = arith.constant 0 : index
      %c0_11 = arith.constant 0 : index
      %13 = vector.load %arg6[%c0_10, %c0_11] : memref<8x128xf32, #tpu.memory_space<vmem>>, vector<8x128xf32>
      tpu.vector_store %arg6[%c0_10, %c0_11], %12 {strides = array<i32>} : memref<8x128xf32, #tpu.memory_space<vmem>>, vector<8x128xf32>,
    } else {
    }
    %c0 = arith.constant 0 : index
    %c0_1 = arith.constant 0 : index
    %3 = vector.load %arg6[%c0, %c0_1] : memref<8x128xf32, #tpu.memory_space<vmem>>, vector<8x128xf32>
    %c0_2 = arith.constant 0 : index
    %c0_3 = arith.constant 0 : index
    %4 = vector.load %arg2[%c0_2, %c0_3] : memref<8x128xf32, #tpu.memory_space<vmem>>, vector<8x128xf32>
    %c0_4 = arith.constant 0 : index
    %c0_5 = arith.constant 0 : index
    %5 = vector.load %arg3[%c0_4, %c0_5] : memref<128x128xf32, #tpu.memory_space<vmem>>, vector<128x128xf32>
    %cst = arith.constant dense<0.000000e+00> : vector<8x128xf32>
    %6 = tpu.matmul %4, %5, %cst {dimension_numbers = #tpu.dot_dimension_numbers<[1], [1], [0], [0], [0, 0, 1, 0], [], []>} : vector<8x128xf32>, vector<128x128xf32>, vector<8x128xf32> -> vector<8x128xf32>
    %7 = arith.addf %3, %6 : vector<8x128xf32>
    %c0_6 = arith.constant 0 : index
    %c0_7 = arith.constant 0 : index
    %8 = vector.load %arg6[%c0_6, %c0_7] : memref<8x128xf32, #tpu.memory_space<vmem>>, vector<8x128xf32>
    tpu.vector_store %arg6[%c0_6, %c0_7], %7 {strides = array<i32>} : memref<8x128xf32, #tpu.memory_space<vmem>>, vector<8x128xf32>,
    %c1_i32 = arith.constant 1 : i32
    %9 = arith.cmpi eq, %arg1, %c1_i32 : i32
    %10 = arith.extui %9 : i1 to i32
    %c0_i32_8 = arith.constant 0 : i32
    %11 = arith.cmpi ne, %10, %c0_i32_8 : i32
    scf.if %11 {
      %c0_9 = arith.constant 0 : index
      %c0_10 = arith.constant 0 : index
      %12 = vector.load %arg4[%c0_9, %c0_10] : memref<2x128xf32, #tpu.memory_space<vmem>>, vector<2x128xf32>
      %c0_11 = arith.constant 0 : index
      %c0_12 = arith.constant 0 : index
      %13 = vector.load %arg6[%c0_11, %c0_12] : memref<8x128xf32, #tpu.memory_space<vmem>>, vector<8x128xf32>
      %14 = vector.extract_strided_slice %12 {offsets = [0, 0], sizes = [1, 128], strides = [1, 1]} : vector<2x128xf32> to vector<1x128xf32>
      %15 = vector.extract_strided_slice %12 {offsets = [1, 0], sizes = [1, 128], strides = [1, 1]} : vector<2x128xf32> to vector<1x128xf32>
      %cst_13 = arith.constant dense<0.000000e+00> : vector<128xf32>
      %16 = vector.multi_reduction <add>, %13, %cst_13 [0] : vector<8x128xf32> to vector<128xf32>
      %17 = vector.shape_cast %16 : vector<128xf32> to vector<1x128xf32>
      %18 = arith.mulf %13, %13 : vector<8x128xf32>
      %cst_14 = arith.constant dense<0.000000e+00> : vector<128xf32>
      %19 = vector.multi_reduction <add>, %18, %cst_14 [0] : vector<8x128xf32> to vector<128xf32>
      %20 = vector.shape_cast %19 : vector<128xf32> to vector<1x128xf32>
      %cst_15 = arith.constant 1.250000e-01 : f32
      %21 = vector.broadcast %cst_15 : f32 to vector<1x128xf32>
      %22 = arith.mulf %17, %21 : vector<1x128xf32>
      %cst_16 = arith.constant 1.250000e-01 : f32
      %23 = vector.broadcast %cst_16 : f32 to vector<1x128xf32>
      %24 = arith.mulf %20, %23 : vector<1x128xf32>
      %25 = arith.mulf %22, %22 : vector<1x128xf32>
      %26 = arith.subf %24, %25 : vector<1x128xf32>
      %cst_17 = arith.constant 0.000000e+00 : f32
      %27 = vector.broadcast %cst_17 : f32 to vector<1x128xf32>
      %28 = arith.maximumf %26, %27 : vector<1x128xf32>
      %29 = vector.broadcast %22 : vector<1x128xf32> to vector<8x128xf32>
      %30 = arith.subf %13, %29 : vector<8x128xf32>
      %cst_18 = arith.constant 9.99999974E-6 : f32
      %31 = vector.broadcast %cst_18 : f32 to vector<1x128xf32>
      %32 = arith.addf %28, %31 : vector<1x128xf32>
      %33 = math.rsqrt %32 : vector<1x128xf32>
      %34 = vector.broadcast %33 : vector<1x128xf32> to vector<8x128xf32>
      %35 = arith.mulf %30, %34 : vector<8x128xf32>
      %36 = vector.broadcast %14 : vector<1x128xf32> to vector<8x128xf32>
      %37 = arith.mulf %35, %36 : vector<8x128xf32>
      %38 = vector.broadcast %15 : vector<1x128xf32> to vector<8x128xf32>
      %39 = arith.addf %37, %38 : vector<8x128xf32>
      %cst_19 = arith.constant 5.000000e-01 : f32
      %40 = vector.broadcast %cst_19 : f32 to vector<8x128xf32>
      %41 = arith.mulf %40, %39 : vector<8x128xf32>
      %cst_20 = arith.constant 0.707106769 : f32
      %42 = vector.broadcast %cst_20 : f32 to vector<8x128xf32>
      %43 = arith.mulf %39, %42 : vector<8x128xf32>
      %44 = math.erf %43 : vector<8x128xf32>
      %cst_21 = arith.constant 1.000000e+00 : f32
      %45 = vector.broadcast %cst_21 : f32 to vector<8x128xf32>
      %46 = arith.addf %45, %44 : vector<8x128xf32>
      %47 = arith.mulf %41, %46 : vector<8x128xf32>
      %c0_22 = arith.constant 0 : index
      %c0_23 = arith.constant 0 : index
      %48 = vector.load %arg5[%c0_22, %c0_23] : memref<8x128xf32, #tpu.memory_space<vmem>>, vector<8x128xf32>
      tpu.vector_store %arg5[%c0_22, %c0_23], %47 {strides = array<i32>} : memref<8x128xf32, #tpu.memory_space<vmem>>, vector<8x128xf32>,
    } else {
    }
    return
  }
  func.func @transform_0(%arg0: i32, %arg1: i32) -> (i32, i32) {
    %c0_i32 = arith.constant 0 : i32
    %c0_i32_0 = arith.constant 0 : i32
    return %c0_i32, %arg1 : i32, i32
  }
  func.func @transform_1(%arg0: i32, %arg1: i32) -> (i32, i32) {
    %c0_i32 = arith.constant 0 : i32
    return %arg0, %arg1 : i32, i32
  }
  func.func @transform_2(%arg0: i32, %arg1: i32) -> (i32, i32) {
    %c0_i32 = arith.constant 0 : i32
    %c0_i32_0 = arith.constant 0 : i32
    return %c0_i32, %arg0 : i32, i32
  }
  func.func @transform_3(%arg0: i32, %arg1: i32) -> (i32, i32) {
    %c0_i32 = arith.constant 0 : i32
    %c0_i32_0 = arith.constant 0 : i32
    return %c0_i32, %arg0 : i32, i32
  }
}

</mosaic_0001>

<bundles_post_ra>
// kernel: tpu_custom_call.1
= control target key start
LH: loop header
LB: loop body
LE: loop exit
PB: predicated region body
PF: predicated region fallthrough
CT: control target
= control target key end

     0   :  { %s1415_s0 = inlined_call_operand.hbm [shape: f32[8,256], index: 0, kind: input, shape index: {}]   ;;  %s1416_s1 = inlined_call_operand.hbm [shape: f32[256,256], index: 1, kind: input, shape index: {}]   ;;  %s1417_s2 = inlined_call_operand.hbm [shape: f32[2,256], index: 2, kind: input, shape index: {}]   ;;  %s1418_s3 = inlined_call_operand.hbm [shape: f32[8,256], index: 3, kind: output, shape index: {}]  }
   0x1   :  { %1431 = sst [smem:[#allocation21_spill]] %s1415_s0 }
   0x2   :  { %1432 = sst [smem:[#allocation22_spill]] %s1416_s1 }
   0x3   :  { %1433 = sst [smem:[#allocation23_spill]] %s1418_s3 }
   0x4   :  { %8 = vsyncpa [#allocation4], 0 }
   0x5   :  { %10 = vsyncpa [#allocation4 + $0x1], 0 }
   0x6   :  { %11 = vsyncpa [#allocation7], 0 }
   0x7   :  { %13 = vsyncpa [#allocation7 + $0x1], 0 }
   0x8   :  { %14 = vsyncpa [#allocation5], 0 }
   0x9   :  { %16 = vsyncpa [#allocation5 + $0x1], 0  ;;  %s1046_s12 = smov 0   ;;  %s1048_s13 = smov 0  }
   0xa   :  { %s1050_s14 = smov 0   ;;  %s1052_s15 = smov 0  }
   0xb   :  { %s1054_s16 = smov 0   ;;  %s1056_s17 = smov 0  }
   0xc   :  { %s1058_s18 = smov 0   ;;  %s1060_s19 = smov 0  }
   0xd   :  { %s1062_s20 = smov 0   ;;  %s1064_s21 = smov 0  }
   0xe   :  { %s1066_s22 = smov 0   ;;  %s1068_s23 = smov 0  }
   0xf   :  { %s1070_s24 = smov 0   ;;  %s1072_s25 = smov 0  }
  0x10 LB: > { %1434 = sst [smem:[#allocation14_spill]] %s998_s21  ;;  %s1419_s26 = sadd.s32 1, %s1006_s23  ;;  %s1014_s25 = sphi %s1072_s25, %s22_s25   ;;  %s1010_s24 = sphi %s1070_s24, %s1483_s24   ;;  %s1006_s23 = sphi %s1068_s23, %s1471_s23   ;;  %s1002_s22 = sphi %s1066_s22, %s1482_s22   ;;  %s998_s21 = sphi %s1064_s21, %s1470_s21   ;;  %s994_s20 = sphi %s1062_s20, %s1481_s20   ;;  %s990_s19 = sphi %s1060_s19, %s1480_s19   ;;  %s986_s18 = sphi %s1058_s18, %s1479_s18   ;;  %s982_s17 = sphi %s1056_s17, %s1478_s17   ;;  %s978_s16 = sphi %s1054_s16, %s1477_s16   ;;  %s974_s15 = sphi %s1052_s15, %s1476_s15   ;;  %s970_s14 = sphi %s1050_s14, %s1475_s14   ;;  %s966_s13 = sphi %s1048_s13, %s1474_s13   ;;  %s962_s12 = sphi %s1046_s12, %s1473_s12  }
  0x11   : > { %1435 = sst [smem:[#allocation15_spill]] %s1002_s22  ;;  %s34_s27 = sadd.s32 1, %s1010_s24 }
  0x12   : > { %1436 = sst [smem:[#allocation16_spill]] %s1006_s23  ;;  %p1120_p0 = scmp.ge.s32.totalorder %s1419_s26, 2 }
  0x13   : > { %p1428_p1 = scmp.eq.s32.totalorder %s1014_s25, 0  ;;  %p76_p2 = scmp.ne.s32.totalorder %s982_s17, %s978_s16 }
  0x14   : > { %s1485_s27 = smov (!%p1120_p0, %s34_s27), %s1010_s24  ;;  %p82_p4 = scmp.ne.s32.totalorder %s978_s16, %s974_s15 }
  0x15   : > { %p1135_p3 = por %p76_p2, %p1428_p1  ;;  %p36_p5 = scmp.ge.s32.totalorder %s1485_s27, 2 }
  0x16   : > { %p1421_p6 = scmp.lt.s32.totalorder %s1014_s25, 4  ;;  %s176_s4 = sand.u32 1, %s1014_s25  }
  0x17   : > { %s178_s5 = sand.u32 1, %s982_s17   ;;  %s1422_s7 = sshll.u32 %s1010_s24, 5 }
  0x18   : > { %s562_s6 = sshll.u32 %s178_s5, 7  ;;  %s186_s8 = sadd.s32 %s1006_s23, %s1422_s7 }
  0x19   : > { %s565_s9 = sshll.u32 %s186_s8, 7  ;;  %s180_s10 = scalar_lea.vmem [#allocation6], %s562_s6 }
  0x1a   : > { %s189_s11 = sshll.u32 %s180_s10, 4  ;;  %s1439_s1 = sld [smem:[#allocation22_spill]]  ;;  %s190_s11 = int_to_ptr.vmem [resolvable:$true] %s189_s11 }
  0x1b   : > { %p1156_p7 = pnand %p1421_p6, %p1135_p3  ;;  %p568_p8 = scmp.ge.s32.totalorder %s1014_s25, 1 }
  0x1c   : > { %s1161_s5 = scalar_lea.sflag [#allocation7], %s176_s4  ;;  %s791_s8 = scalar_lea.vmem %s190_s11, 2048 }
  0x1d   : > { %p780_p9 = pneg %p1156_p7  ;;  %p792_p10 = scmp.ne.s32.totalorder %s190_s11, %s791_s8 }
  0x1e   : > { %s1016_s6 = smov [#allocation6]  }
  0x1f   : > { %p794_p11 = pnand %p792_p10, %p780_p9  ;;  %s796_s26 = sshll.u32 %s1016_s6, 4  ;;  %s797_s26 = int_to_ptr.vmem [resolvable:$false] %s796_s26 }
  0x20   : > { %s188_s3 = scalar_lea.hbm %s1439_s1, %s565_s9  ;;  %s798_s29 = scalar_lea.vmem %s797_s26, 4096 }
  0x21   : > { %p795_p12 = pneg %p794_p11  ;;  %p799_p13 = scmp.lt.s32.totalorder %s190_s11, %s797_s26 }
  0x22   : > { %p800_p2 = scmp.lt.s32.totalorder %s798_s29, %s791_s8 }
  0x24   : > { %p801_p3 = por %p800_p2, %p799_p13 }
  0x26   : > { %p802_p6 = pnand %p801_p3, %p795_p12 }
  0x28   : > { %805 = shalt.err (!%p802_p6)
}
  0x29   : > { %s1017_s30 = smov 256   ;;  %s1018_s4 = smov 128  }
  0x2a   : > { %s1019_s9 = smov 8   ;;  %p215_p6 = scmp.lt.s32.totalorder %s1014_s25, 5 }
  0x2b   : > { %646 = dma.hbm_to_vmem [thread:$0]  (!%p1156_p7), %s188_s3, 2048, %s190_s11, %s1161_s5, %s1017_s30, %s1018_s4, %s1019_s9  }
  0x2c   : > { %p1171_p9 = pnand %p568_p8, %p215_p6  ;;  %s1176_s8 = sadd.s32 4294967295, %s1014_s25  }
  0x2d   : > { %s41_s6 = sadd.s32 1, %s994_s20  ;;  %s1442_s26 = sadd.s32 1, %s1006_s23 }
  0x2e   : > { %s1487_s26 = smov (%p1120_p0, %s1442_s26), 0  ;;  %s1489_s27 = smov (%p36_p5, %s1485_s27), 0 }
  0x2f   : > { %1443 = sst [smem:[#allocation17_spill]] %s1487_s26  ;;  %s38_s3 = ssub.s32 %s1006_s23, %s1487_s26 }
  0x30   : > { %1444 = sst [smem:[#allocation18_spill]] %s1489_s27  ;;  %p48_p7 = scmp.ne.s32.totalorder %s994_s20, %s990_s19 }
  0x31   : > { %p39_p8 = scmp.eq.s32.totalorder %s38_s3, 0  ;;  %p54_p10 = scmp.ne.s32.totalorder %s990_s19, %s986_s18 }
  0x32   : > { %p1198_p11 = por %p1428_p1, %p48_p7  ;;  %p1427_p0 = scmp.eq.s32.totalorder %s1176_s8, 0 }
  0x33   : > { %s1204_s28 = scalar_select %p39_p8, %s994_s20, %s41_s6  }
  0x34   : > { %p1208_p12 = por %p1427_p0, %p54_p10  ;;  %s1214_s29 = ssub.s32 %s1010_s24, %s1489_s27 }
  0x35   : > { %1446 = sst [smem:[#allocation19_spill]] %s1204_s28  ;;  %s66_s30 = sor.u32 %s1214_s29, %s38_s3 }
  0x36   : > { %s1447_s11 = scalar_select %p1208_p12, 1, 0 }
  0x37   : > { %p1222_p5 = por %p82_p4, %p1427_p0  ;;  %p67_p13 = scmp.eq.s32.totalorder %s66_s30, 0 }
  0x38   : > { %1448 = sst [smem:[#allocation20_spill]] %s1447_s11  ;;  %s158_s4 = sand.u32 1, %s994_s20  }
  0x39   : > { %s1449_s18 = scalar_select %p1222_p5, 1, 0 }
  0x3a   : > { %s560_s9 = sshll.u32 %s158_s4, 3  ;;  %s1450_s6 = sadd.s32 1, %s982_s17 }
  0x3b   : > { %s1230_s7 = scalar_select %p67_p13, %s982_s17, %s1450_s6  }
  0x3c   : > { %s561_s1 = sshll.u32 %s1006_s23, 7  ;;  %s1451_s0 = sld [smem:[#allocation21_spill]] }
  0x3d   : > { %s162_s21 = scalar_lea.vmem [#allocation3], %s560_s9  ;;  %p1452_p2 = scmp.lt.s32.totalorder %s1014_s25, 4 }
  0x3e   : > { %s169_s11 = sshll.u32 %s162_s21, 4  ;;  %s159_s3 = scalar_lea.sflag [#allocation4], %s158_s4  ;;  %s170_s11 = int_to_ptr.vmem [resolvable:$true] %s169_s11 }
  0x3f   : > { %p1240_p4 = pnand %p1452_p2, %p1198_p11  ;;  %s819_s30 = scalar_lea.vmem %s170_s11, 128 }
  0x40   : > { %p820_p6 = scmp.ne.s32.totalorder %s170_s11, %s819_s30  ;;  %s1020_s6 = smov [#allocation3]  }
  0x41   : > { %p808_p3 = pneg %p1240_p4  ;;  %s824_s26 = sshll.u32 %s1020_s6, 4  ;;  %s825_s26 = int_to_ptr.vmem [resolvable:$false] %s824_s26 }
  0x42   : > { %s167_s27 = scalar_lea.hbm %s1451_s0, %s561_s1  ;;  %s826_s1 = scalar_lea.vmem %s825_s26, 256 }
  0x43   : > { %p822_p7 = pnand %p820_p6, %p808_p3  ;;  %p827_p10 = scmp.lt.s32.totalorder %s170_s11, %s825_s26 }
  0x44   : > { %p828_p13 = scmp.lt.s32.totalorder %s826_s1, %s819_s30 }
  0x45   : > { %p823_p8 = pneg %p822_p7 }
  0x46   : > { %p829_p0 = por %p828_p13, %p827_p10 }
  0x48   : > { %p830_p1 = pnand %p829_p0, %p823_p8 }
  0x4a   : > { %833 = shalt.err (!%p830_p1)
}
  0x4b   : > { %643 = dma.hbm_to_vmem [thread:$0]  (!%p1240_p4), %s167_s27, 128, %s170_s11, %s159_s3  }
  0x4c   : > { %s557_s21 = sadd.s32 4294967294, %s1014_s25   ;;  %p93_p11 = scmp.eq.s32.totalorder %s1214_s29, 0 }
  0x4d   : > { %s95_s22 = sadd.s32 1, %s970_s14  ;;  %p102_p1 = scmp.ne.s32.totalorder %s970_s14, %s966_s13 }
  0x4e   : > { %p108_p0 = scmp.ne.s32.totalorder %s966_s13, %s962_s12  ;;  %p1454_p2 = scmp.eq.s32.totalorder %s1014_s25, 0 }
  0x4f   : > { %s1256_s28 = scalar_select %p93_p11, %s970_s14, %s95_s22  }
  0x50   : > { %p104_p3 = por %p102_p1, %p1454_p2  ;;  %p1455_p6 = scmp.eq.s32.totalorder %s1176_s8, 0 }
  0x51   : > { %p132_p8 = scmp.eq.s32.totalorder %s1176_s8, 3  ;;  %p138_p10 = scmp.eq.s32.totalorder %s557_s21, 3 }
  0x52   : > { %p1262_p7 = por %p108_p0, %p1455_p6  ;;  %s201_s9 = sand.u32 1, %s970_s14  }
  0x53   : > { %p1268_p13 = por %p132_p8, %p102_p1  ;;  %p1272_p4 = por %p138_p10, %p108_p0 }
  0x54   : > { %s566_s29 = sshll.u32 %s201_s9, 1  ;;  %p1459_p11 = scmp.lt.s32.totalorder %s1014_s25, 4 }
  0x55   : > { %s1461_s3 = sshll.u32 %s1010_s24, 5  ;;  %s203_s1 = scalar_lea.vmem [#allocation8], %s566_s29 }
  0x56   : > { %p1278_p5 = pnand %p1459_p11, %p104_p3  ;;  %s208_s26 = scalar_lea.hbm %s1417_s2, %s1461_s3 }
  0x57   : > { %s210_s21 = sshll.u32 %s203_s1, 4  ;;  %s1021_s9 = smov [#allocation8]   ;;  %s211_s21 = int_to_ptr.vmem [resolvable:$true] %s210_s21 }
  0x58   : > { %p836_p1 = pneg %p1278_p5  ;;  %s847_s22 = scalar_lea.vmem %s211_s21, 32 }
  0x59   : > { %p848_p0 = scmp.ne.s32.totalorder %s211_s21, %s847_s22  ;;  %s852_s0 = sshll.u32 %s1021_s9, 4  ;;  %s853_s0 = int_to_ptr.vmem [resolvable:$false] %s852_s0 }
  0x5a   : > { %s854_s23 = scalar_lea.vmem %s853_s0, 64  ;;  %p855_p3 = scmp.lt.s32.totalorder %s211_s21, %s853_s0 }
  0x5b   : > { %p850_p2 = pnand %p848_p0, %p836_p1  ;;  %p856_p8 = scmp.lt.s32.totalorder %s854_s23, %s847_s22 }
  0x5d   : > { %p851_p6 = pneg %p850_p2  ;;  %p857_p10 = por %p856_p8, %p855_p3 }
  0x5f   : > { %p858_p11 = pnand %p857_p10, %p851_p6 }
  0x61   : > { %861 = shalt.err (!%p858_p11)
}
  0x62   : > { %649 = dma.hbm_to_vmem [thread:$0]  (!%p1278_p5), %s208_s26, 32, %s211_s21, %s1161_s5  }
  0x63   : > { %219 = sbr.rel (%p1171_p9) target bundleno = 484 (0x1e4), region = 32  ;;  %s221_s3 = sand.u32 (!%p1171_p9), 1, %s990_s19  }
  0x64   : > { %s1295_s30 = sshll.u32 (!%p1171_p9), %s221_s3, 3  ;;  %s222_s6 = scalar_lea.sflag (!%p1171_p9), [#allocation4], %s221_s3 }
  0x65   : > { %s225_s1 = scalar_lea.vmem (!%p1171_p9), [#allocation3], %s1295_s30 }
  0x68   : > { %945 = dma.done.wait (%p1208_p12), %s222_s6, 128  }
  0x69   : > { %947 = vsyncadd (%p1208_p12), %s222_s6, 4294967168  ;;  %s230_s0 = sand.u32 1, %s1176_s8   ;;  %s232_s23 = sand.u32 1, %s978_s16  }
  0x6a   : > { %s570_s5 = sshll.u32 %s232_s23, 7  ;;  %s231_s10 = scalar_lea.sflag [#allocation7], %s230_s0 }
  0x6b   : > { %s1304_s15 = scalar_lea.vmem [#allocation6], %s570_s5  ;;  %p1463_p9 = scmp.ne.s32.totalorder %s1449_s18, 0 }
  0x6d   : > { %949 = dma.done.wait (%p1463_p9), %s231_s10, 2048  }
  0x6e   : > { %951 = vsyncadd (%p1463_p9), %s231_s10, 4294965248  ;;  %s1311_s26 = sand.u32 1, %s966_s13  }
  0x6f   : > { %s571_s21 = sshll.u32 %s1311_s26, 1 }
  0x70   : > { %s1314_s22 = scalar_lea.vmem [#allocation8], %s571_s21 }
  0x71   : > { %953 = dma.done.wait (%p1262_p7), %s231_s10, 32  }
  0x72   : > { %955 = vsyncadd (%p1262_p7), %s231_s10, 4294967264  ;;  %s572_s8 = sshll.u32 %s1311_s26, 3  ;;  %s1464_s29 = sld [smem:[#allocation14_spill]] }
  0x73   : > { %s1321_s9 = scalar_lea.vmem [#allocation9], %s572_s8 }
  0x78   : > { %p573_p12 = scmp.ne.s32.totalorder %s1464_s29, 0 }
  0x7a   : > { %280 = sbr.rel (%p573_p12) target bundleno = 129 (0x81), region = 48 }
  0x7f   : > { %v1022_v0 = vmov 0.0  }
  0x80   : > { %281 = vst [vmem:[#allocation2] sm:$0xff] %v1022_v0 }
  0x81 PF: > { %v299_v1 = vld [vmem:[%s1304_s15 + $0x78] sm:$0xff]  ;;  %v1023_v2 = vmov 0.0   ;;  %vm1024_vm0 = vmmov 0   ;;  %v298_v3 = vld [vmem:[%s1304_s15 + $0x70] sm:$0xff]  ;;  %v297_v4 = vld [vmem:[%s1304_s15 + $0x68] sm:$0xff]  ;;  %s1465_s18 = sld [smem:[#allocation14_spill]] }
  0x82   : > { %597 = vmatprep.subr.mxu0 %v1023_v2  ;;  %629 = vmatprep.mubr.msk.f32.mxu0 %vm1024_vm0, %v1023_v2  ;;  %v296_v5 = vld [vmem:[%s1304_s15 + $0x60] sm:$0xff]  ;;  %v295_v6 = vld [vmem:[%s1304_s15 + $0x58] sm:$0xff]  ;;  %v294_v7 = vld [vmem:[%s1304_s15 + $0x50] sm:$0xff] }
  0x83   : > { %598 = vmatpush3.xpose.msra.mxu0 %v299_v1  ;;  %v293_v8 = vld [vmem:[%s1304_s15 + $0x48] sm:$0xff]  ;;  %v292_v9 = vld [vmem:[%s1304_s15 + $0x40] sm:$0xff]  ;;  %v291_v10 = vld [vmem:[%s1304_s15 + $0x38] sm:$0xff] }
  0x84   : > { %599 = vmatprep.subr.mxu0 %v1023_v2  ;;  %v290_v11 = vld [vmem:[%s1304_s15 + $0x30] sm:$0xff]  ;;  %v289_v12 = vld [vmem:[%s1304_s15 + $0x28] sm:$0xff]  ;;  %v288_v13 = vld [vmem:[%s1304_s15 + $0x20] sm:$0xff] }
  0x85   : > { %v287_v14 = vld [vmem:[%s1304_s15 + $0x18] sm:$0xff]  ;;  %v286_v15 = vld [vmem:[%s1304_s15 + $0x10] sm:$0xff]  ;;  %v285_v16 = vld [vmem:[%s1304_s15 + $0x8] sm:$0xff] }
  0x86   : > { %v284_v17 = vld [vmem:[%s1304_s15] sm:$0xff]  ;;  %v283_v18 = vld [vmem:[%s225_s1] sm:$0xff] }
  0x87   : > { %600 = vmatpush3.xpose.msra.mxu0 %v298_v3  ;;  %v282_v19 = vld [vmem:[#allocation2] sm:$0xff]  ;;  %p574_p5 = scmp.ne.s32.totalorder %s1465_s18, 1 }
  0x88   : > { %601 = vmatprep.subr.mxu0 %v1023_v2 }
  0x8b   : > { %602 = vmatpush3.xpose.msra.mxu0 %v297_v4 }
  0x8c   : > { %603 = vmatprep.subr.mxu0 %v1023_v2 }
  0x8f   : > { %604 = vmatpush3.xpose.msra.mxu0 %v296_v5 }
  0x90   : > { %605 = vmatprep.subr.mxu0 %v1023_v2 }
  0x93   : > { %606 = vmatpush3.xpose.msra.mxu0 %v295_v6 }
  0x94   : > { %607 = vmatprep.subr.mxu0 %v1023_v2 }
  0x97   : > { %608 = vmatpush3.xpose.msra.mxu0 %v294_v7 }
  0x98   : > { %609 = vmatprep.subr.mxu0 %v1023_v2 }
  0x9b   : > { %610 = vmatpush3.xpose.msra.mxu0 %v293_v8 }
  0x9c   : > { %611 = vmatprep.subr.mxu0 %v1023_v2 }
  0x9f   : > { %612 = vmatpush3.xpose.msra.mxu0 %v292_v9 }
  0xa0   : > { %613 = vmatprep.subr.mxu0 %v1023_v2 }
  0xa3   : > { %614 = vmatpush3.xpose.msra.mxu0 %v291_v10 }
  0xa4   : > { %615 = vmatprep.subr.mxu0 %v1023_v2 }
  0xa7   : > { %616 = vmatpush3.xpose.msra.mxu0 %v290_v11 }
  0xa8   : > { %617 = vmatprep.subr.mxu0 %v1023_v2 }
  0xab   : > { %618 = vmatpush3.xpose.msra.mxu0 %v289_v12 }
  0xac   : > { %619 = vmatprep.subr.mxu0 %v1023_v2 }
  0xaf   : > { %620 = vmatpush3.xpose.msra.mxu0 %v288_v13 }
  0xb0   : > { %621 = vmatprep.subr.mxu0 %v1023_v2 }
  0xb3   : > { %622 = vmatpush3.xpose.msra.mxu0 %v287_v14 }
  0xb4   : > { %623 = vmatprep.subr.mxu0 %v1023_v2 }
  0xb7   : > { %624 = vmatpush3.xpose.msra.mxu0 %v286_v15 }
  0xb8   : > { %625 = vmatprep.subr.mxu0 %v1023_v2 }
  0xbb   : > { %626 = vmatpush3.xpose.msra.mxu0 %v285_v16 }
  0xbc   : > { %627 = vmatprep.subr.mxu0 %v1023_v2 }
  0xbf   : > { %628 = vmatpush3.xpose.msra.mxu0 %v284_v17 }
  0xc2   : > { %630 = vmatmul.mubr.f32.vlgmr.msra.gmra.mxu0 %v283_v18 }
 0x181   : > { %375 = sbr.rel (%p574_p5) target bundleno = 460 (0x1cc), region = 52 }
 0x182   : > { %v366_v20 = vpop.f32.mrf.mxu0 }
 0x183   : > { %v370_v21 = vadd.f32 %v366_v20, %v282_v19 }
 0x184   : > { %v631_v22 = vpop.f32.mrf.mxu0 }
 0x185   : > { %371 = vst [vmem:[#allocation2] sm:$0xff] %v370_v21 }
 0x186   : > { %v400_v43 = vlaneseq  ;;  %v376_v46 = vld [vmem:[%s1314_s22] sm:$0x3] }
 0x188   : > { %v401_v44 = vshrl.u32 %v400_v43, 7 }
 0x18a   : > { %v402_v45 = vsub.s32 0, %v401_v44  ;;  %v407_v48 = vsub.s32 1, %v401_v44 }
 0x18c   : > { %v377_v23 = vld [vmem:[#allocation2] sm:$0xff]  ;;  %v403_v49 = vrot.slane %v376_v46, %v402_v45  ;;  %v408_v52 = vrot.slane %v376_v46, %v407_v48 }
 0x18d   : > { %v378_v24 = vrot.slane %v377_v23, 4  ;;  %v384_v25 = vmul.f32 %v377_v23, %v377_v23 }
 0x18f   : > { %v379_v26 = vadd.f32 %v378_v24, %v377_v23  ;;  %v385_v27 = vrot.slane %v384_v25, 4 }
 0x191   : > { %v380_v28 = vrot.slane %v379_v26, 2  ;;  %v386_v29 = vadd.f32 %v385_v27, %v384_v25 }
 0x193   : > { %v381_v30 = vadd.f32 %v380_v28, %v379_v26  ;;  %v387_v31 = vrot.slane %v386_v29, 2 }
 0x195   : > { %v382_v32 = vrot.slane %v381_v30, 1  ;;  %v388_v33 = vadd.f32 %v387_v31, %v386_v29 }
 0x197   : > { %v383_v34 = vadd.f32 %v382_v32, %v381_v30  ;;  %v389_v35 = vrot.slane %v388_v33, 1 }
 0x199   : > { %v390_v36 = vadd.f32 %v389_v35, %v388_v33  ;;  %v391_v37 = vmul.f32 0.125, %v383_v34 }
 0x19b   : > { %v392_v38 = vmul.f32 0.125, %v390_v36  ;;  %v393_v39 = vmul.f32 %v391_v37, %v391_v37  ;;  %v396_v47 = vsub.f32 %v377_v23, %v391_v37 }
 0x19d   : > { %v394_v40 = vsub.f32 %v392_v38, %v393_v39 }
 0x19f   : > { %v395_v41 = vmax.f32 %v394_v40, 0.0 }
 0x1a1   : > { %v397_v42 = vadd.f32 1e-05, %v395_v41 }
 0x1a3   : > { %774 = vrsqrt.f32 %v397_v42 }
 0x1b0   : > { %v775_v50 = vpop.eup %774 }
 0x1b1   : > { %v399_v51 = vmul.f32 %v775_v50, %v396_v47 }
 0x1b3   : > { %v404_v53 = vmul.f32 %v403_v49, %v399_v51 }
 0x1b5   : > { %v409_v54 = vadd.f32 %v408_v52, %v404_v53 }
 0x1b7   : > { %v411_v55 = vmul.f32 0.70710677, %v409_v54  ;;  %v410_v56 = vmul.f32 0.5, %v409_v54 }
 0x1b9   : > { %776 = verf.f32 %v411_v55 }
 0x1c6   : > { %v777_v57 = vpop.eup %776 }
 0x1c7   : > { %v413_v58 = vadd.f32 1.0, %v777_v57 }
 0x1c9   : > { %v414_v59 = vmul.f32 %v413_v58, %v410_v56 }
 0x1cb   : > { %415 = vst [vmem:[%s1321_s9] sm:$0xff] %v414_v59 }
 0x1cc PF: > { %s1466_s4 = sld [smem:[#allocation15_spill]]  ;;  %s430_s23 = sshll.u32 %s1321_s9, 4  ;;  %s431_s23 = int_to_ptr.vmem [resolvable:$true] %s430_s23 }
 0x1cd   : > { %s1467_s1 = sld [smem:[#allocation23_spill]]  ;;  %s417_s5 = scalar_lea.sflag [#allocation5], %s1311_s26 }
 0x1ce   : > { %s862_s10 = scalar_lea.vmem %s431_s23, 128  ;;  %s1025_s15 = smov [#allocation9]  }
 0x1cf   : > { %p863_p7 = scmp.ne.s32.totalorder %s431_s23, %s862_s10  ;;  %s866_s21 = sshll.u32 %s1025_s15, 4  ;;  %s867_s21 = int_to_ptr.vmem [resolvable:$false] %s866_s21 }
 0x1d0   : > { %s868_s22 = scalar_lea.vmem %s867_s21, 256  ;;  %p869_p2 = scmp.lt.s32.totalorder %s431_s23, %s867_s21 }
 0x1d1   : > { %p864_p1 = pnand %p863_p7, %p1268_p13  ;;  %p870_p6 = scmp.lt.s32.totalorder %s868_s22, %s862_s10 }
 0x1d2   : > { %s576_s3 = sshll.u32 %s1466_s4, 7 }
 0x1d3   : > { %s428_s0 = scalar_lea.hbm %s1467_s1, %s576_s3  ;;  %p865_p0 = pneg %p864_p1 }
 0x1d4   : > { %p871_p3 = por %p870_p6, %p869_p2 }
 0x1d6   : > { %p872_p8 = pnand %p871_p3, %p865_p0 }
 0x1d8   : > { %875 = shalt.err (!%p872_p8)
}
 0x1d9   : > { %s876_s8 = scalar_lea.hbm %s428_s0, 128  ;;  %s880_s29 = scalar_lea.hbm %s1467_s1, 256 }
 0x1da   : > { %p877_p10 = scmp.ne.s32.totalorder %s428_s0, %s876_s8  ;;  %p881_p12 = scmp.lt.s32.totalorder %s428_s0, %s1467_s1 }
 0x1db   : > { %p882_p5 = scmp.lt.s32.totalorder %s880_s29, %s876_s8 }
 0x1dc   : > { %p878_p11 = pnand %p877_p10, %p1268_p13 }
 0x1dd   : > { %p883_p7 = por %p882_p5, %p881_p12 }
 0x1de   : > { %p879_p9 = pneg %p878_p11 }
 0x1e0   : > { %p884_p1 = pnand %p883_p7, %p879_p9 }
 0x1e2   : > { %887 = shalt.err (!%p884_p1)
}
 0x1e3   : > { %638 = dma.vmem_to_hbm [thread:$0]  (%p1268_p13), %s431_s23, 128, %s428_s0, %s417_s5  }
 0x1e4 PF: > { %p655_p0 = scmp.ge.s32.totalorder %s1014_s25, 2  ;;  %s442_s3 = sand.u32 1, %s962_s12  }
 0x1e5   : > { %s443_s30 = scalar_lea.sflag [#allocation5], %s442_s3 }
 0x1e6   : > { %p651_p2 = pnand %p655_p0, %p1272_p4 }
 0x1e8   : > { %p652_p6 = pneg %p651_p2 }
 0x1ea   : > { %957 = dma.done.wait (%p652_p6), %s443_s30, 128  }
 0x1eb   : > { %959 = vsyncadd (%p652_p6), %s443_s30, 4294967168  ;;  %s22_s25 = sadd.s32 1, %s1014_s25   ;;  %s1469_s27 = sld [smem:[#allocation19_spill]] }
 0x1ec   : > { %p1368_p3 = scmp.ge.s32.totalorder %s22_s25, 6   ;;  %s1470_s21 = sld [smem:[#allocation16_spill]] }
 0x1ed   : > { %s1471_s23 = sld [smem:[#allocation17_spill]]  ;;  %s1473_s12 = smov %s966_s13 }
 0x1ee   : > { %s1472_s11 = sld [smem:[#allocation18_spill]]  ;;  %s1474_s13 = smov %s970_s14 }
 0x1ef   : > { %s1475_s14 = smov %s1256_s28  ;;  %s1476_s15 = smov %s978_s16 }
 0x1f0   : > { %s1477_s16 = smov %s982_s17  ;;  %s1478_s17 = smov %s1230_s7 }
 0x1f1   : > { %s1479_s18 = smov %s990_s19  ;;  %s1480_s19 = smov %s994_s20 }
 0x1f2   : > { %s1481_s20 = smov %s1469_s27  ;;  %s1482_s22 = smov %s1010_s24 }
 0x1f3   :  { %21 = sbr.rel (!%p1368_p3) target bundleno = 16 (0x10), region = 109 }
 0x1f4   : > { %s1483_s24 = smov %s1472_s11 }
 0x1f8   :  { %448 = vsyncpa [#allocation4], 1 }
 0x1f9   :  { %450 = vsyncpa [#allocation4 + $0x1], 1 }
 0x1fa   :  { %451 = vsyncpa [#allocation7], 1 }
 0x1fb   :  { %453 = vsyncpa [#allocation7 + $0x1], 1 }
 0x1fc   :  { %454 = vsyncpa [#allocation5], 1 }
 0x1fd   :  { %456 = vsyncpa [#allocation5 + $0x1], 1 }

</bundles_post_ra>
